<compile_context>
chip_gen: v7x
topology: tpu7x:2x2x1
jax: 0.10.0
libtpu: 0.0.40
codegen_flags: <defaults>
</compile_context>

<pallas_src>
import math

import jax
import jax.numpy as jnp
import numpy as np
from jax.experimental import pallas as pl
from jax.experimental.pallas import tpu as pltpu

_LANE = 128       # full lane width -> unmasked full-vreg stores
_ROW_ALIGN = 32   # row multiple that keeps f32/bf16/int8 sublane packing legal
_FALLBACK_CHUNK_ELEMS = 128 * 1024   # (1, N) tiles pad to 8 sublanes in VMEM; keep modest


def _copy_kernel(x_ref, o_ref):
    # Elementwise identity on one VMEM tile.
    o_ref[...] = x_ref[...]


def _round_up(v, mult):
    return ((v + mult - 1) // mult) * mult


def _tpu_budget():
    """Return (target tile bytes per buffer, vmem_limit_bytes) per generation."""
    try:
        vmem_cap = int(pltpu.get_tpu_info().vmem_capacity_bytes)
    except Exception:
        vmem_cap = 64 * 1024 * 1024  # assume the smallest (v7x per-TC) if unknown
    if vmem_cap >= 128 * 1024 * 1024:
        # v5e / v6e: 128 MiB physical VMEM -> 8 MiB tiles, 64 MiB scoped limit.
        return 8 * 1024 * 1024, 64 * 1024 * 1024
    # v7x: 64 MiB physical VMEM -> 4 MiB tiles, cap scoped VMEM at 40 MiB.
    return 4 * 1024 * 1024, 40 * 1024 * 1024


def pallas_identity_copy(x, max_tile_bytes=None):
    """Materialized identity copy of `x` via a tiled, pipelined Pallas kernel."""
    orig_shape = x.shape
    dtype = x.dtype
    total = int(math.prod(orig_shape)) if orig_shape else 1
    if total == 0:
        return x  # zero-element array: nothing to copy

    itemsize = np.dtype(dtype).itemsize
    tile_bytes, vmem_limit = _tpu_budget()
    if max_tile_bytes is not None:
        tile_bytes = int(max_tile_bytes)

    cparams = pltpu.CompilerParams(
        dimension_semantics=("parallel",),
        vmem_limit_bytes=vmem_limit,
    )
    cost = pl.CostEstimate(
        flops=0, transcendentals=0, bytes_accessed=2 * total * itemsize)

    flat = x.reshape(total)

    if total % _LANE == 0:
        # ---- Main lane-dense path: (m, width) slab, big pipelined tiles. ----
        width = next(w for w in (1024, 512, 256, 128) if total % w == 0)
        m = total // width

        rows_per_tile = max(_ROW_ALIGN, tile_bytes // (width * itemsize))
        rows_per_tile = _round_up(rows_per_tile, _ROW_ALIGN)

        if m <= rows_per_tile:
            if m >= 256:
                # Large enough to matter: split into 2 blocks so the "parallel"
                # grid axis can shard across v7x's two TensorCores.
                tile_m = min(m, _round_up(-(-m // 2), _ROW_ALIGN))
            else:
                tile_m = m  # full dim: always a legal block shape
        else:
            tile_m = rows_per_tile

        grid_m = pl.cdiv(m, tile_m)

        out2d = pl.pallas_call(
            _copy_kernel,
            out_shape=jax.ShapeDtypeStruct((m, width), dtype),
            grid=(grid_m,),
            in_specs=[pl.BlockSpec((tile_m, width), lambda i: (i, 0))],
            out_specs=pl.BlockSpec((tile_m, width), lambda i: (i, 0)),
            compiler_params=cparams,
            cost_estimate=cost,
        )(flat.reshape(m, width))
        return out2d.reshape(orig_shape)

    # ---- Pad-free fallback: element count not a multiple of 128. ----
    # Copy as a (1, total) row chunked along lanes; the final block may be
    # partial (masked store).  No jnp.pad / slice -> no extra HBM round trips.
    tile_e = total if total <= _FALLBACK_CHUNK_ELEMS else _FALLBACK_CHUNK_ELEMS
    grid_e = pl.cdiv(total, tile_e)

    out1d = pl.pallas_call(
        _copy_kernel,
        out_shape=jax.ShapeDtypeStruct((1, total), dtype),
        grid=(grid_e,),
        in_specs=[pl.BlockSpec((1, tile_e), lambda i: (0, i))],
        out_specs=pl.BlockSpec((1, tile_e), lambda i: (0, i)),
        compiler_params=cparams,
        cost_estimate=cost,
    )(flat.reshape(1, total))
    return out1d.reshape(orig_shape)


def fmodule_forward(x, f=None):
    """Pallas/JAX equivalent of FModule(f)(x).

    For the default (identity) case, the fastest correct implementation is to
    launch no kernel at all and return the input unchanged.
    """
    if f is None:
        return x  # identity fast path: zero HBM traffic, zero launch overhead
    return f(x)
    # TODO(synk): FModule accepts an arbitrary user-supplied callable `f`;
    # arbitrary callables have no generic Pallas translation, only the default
    # identity path (and an explicit materialized-copy kernel) is provided.


if __name__ == "__main__":
    key = jax.random.PRNGKey(0)
    k1, k2, k3 = jax.random.split(key, 3)

    # NCHW input consistent with typical usage: batch=2, channels=4, 16x16.
    x = jax.random.normal(k1, (2, 4, 16, 16), dtype=jnp.float32)

    # 1) Module forward (identity fast path): no kernel, returns x unchanged.
    y_fast = fmodule_forward(x)
    jax.block_until_ready(y_fast)
    assert y_fast.shape == x.shape and y_fast.dtype == x.dtype
    assert bool(jnp.all(y_fast == x))

    # 2) Materialized-copy Pallas kernel, lane-dense main path (2048 -> (2, 1024)).
    y = pallas_identity_copy(x)
    jax.block_until_ready(y)
    assert y.shape == x.shape and y.dtype == x.dtype
    assert bool(jnp.all(y == x))

    # 3) Multi-block pipelined grid with a partial (masked) last row block:
    #    (250, 512) f32 with deliberately small tiles to exercise the tiled path.
    x3 = jax.random.normal(k2, (250, 512), dtype=jnp.float32)
    y3 = pallas_identity_copy(x3, max_tile_bytes=128 * 1024)
    jax.block_until_ready(y3)
    assert y3.shape == x3.shape and y3.dtype == x3.dtype
    assert bool(jnp.all(y3 == x3))

    # 4) Element count not a multiple of 128 (7*19 = 133): pad-free fallback path.
    x4 = jax.random.normal(k3, (7, 19), dtype=jnp.float32)
    y4 = pallas_identity_copy(x4)
    jax.block_until_ready(y4)
    assert y4.shape == x4.shape and y4.dtype == x4.dtype
    assert bool(jnp.all(y4 == x4))

    print("KERNEL_OK")
</pallas_src>

<mosaic_0001>
module attributes {stable_mosaic.version = 11 : i64} {
  func.func @_copy_kernel(%arg0: i32, %arg1: memref<2x1024xf32, #tpu.memory_space<vmem>>, %arg2: memref<2x1024xf32, #tpu.memory_space<vmem>>) attributes {dimension_semantics = [#tpu.dimension_semantics<parallel>], iteration_bounds = array<i64: 1>, scalar_prefetch = 0 : i64, scratch_operands = 0 : i64, tpu.core_type = #tpu.core_type<tc>, window_params = [{transform_indices = @transform_0, window_bounds = array<i64: 2, 1024>}, {transform_indices = @transform_1, window_bounds = array<i64: 2, 1024>}]} {
    %c0 = arith.constant 0 : index
    %c0_0 = arith.constant 0 : index
    %0 = vector.load %arg1[%c0, %c0_0] : memref<2x1024xf32, #tpu.memory_space<vmem>>, vector<2x1024xf32>
    %c0_1 = arith.constant 0 : index
    %c0_2 = arith.constant 0 : index
    %1 = vector.load %arg2[%c0_1, %c0_2] : memref<2x1024xf32, #tpu.memory_space<vmem>>, vector<2x1024xf32>
    tpu.vector_store %arg2[%c0_1, %c0_2], %0 {strides = array<i32>} : memref<2x1024xf32, #tpu.memory_space<vmem>>, vector<2x1024xf32>,
    return
  }
  func.func @transform_0(%arg0: i32) -> (i32, i32) {
    %c0_i32 = arith.constant 0 : i32
    %c0_i32_0 = arith.constant 0 : i32
    return %arg0, %c0_i32 : i32, i32
  }
  func.func @transform_1(%arg0: i32) -> (i32, i32) {
    %c0_i32 = arith.constant 0 : i32
    %c0_i32_0 = arith.constant 0 : i32
    return %arg0, %c0_i32 : i32, i32
  }
}

</mosaic_0001>

<bundles_post_ra>
// kernel: tpu_custom_call.1
= control target key start
LH: loop header
LB: loop body
LE: loop exit
PB: predicated region body
PF: predicated region fallthrough
CT: control target
= control target key end

     0   :  { %6 = vsyncpa [#allocation3], 0  ;;  %s126_s0 = inlined_call_operand.hbm [shape: f32[2,1024], index: 0, kind: input, shape index: {}]   ;;  %s127_s1 = inlined_call_operand.hbm [shape: f32[2,1024], index: 1, kind: output, shape index: {}]  }
   0x1   :  { %7 = vsyncpa [#allocation4], 0  ;;  %s90_s6 = smov [#allocation2]   ;;  %s42_s10 = scalar_lea.hbm %s126_s0, 256 }
   0x2   :  { %s14_s7 = sshll.u32 %s90_s6, 4  ;;  %p43_p0 = scmp.ne.s32.totalorder %s126_s0, %s42_s10  ;;  %s15_s7 = int_to_ptr.vmem [resolvable:$true] %s14_s7 }
   0x3   :  { %p46_p1 = scmp.lt.u32.totalorder %s42_s10, %s126_s0 }
   0x5   :  { %p48_p2 = pnand %p46_p1, %p43_p0 }
   0x7   :  { %51 = shalt.err (!%p48_p2)
}
   0x8   :  { %s52_s15 = scalar_lea.vmem %s15_s7, 256  ;;  %p57_p4 = scmp.lt.s32.totalorder %s15_s7, %s15_s7 }
   0x9   :  { %p53_p3 = scmp.ne.s32.totalorder %s15_s7, %s52_s15  ;;  %p58_p5 = scmp.lt.s32.totalorder %s52_s15, %s52_s15 }
   0xb   :  { %p59_p6 = por %p58_p5, %p57_p4 }
   0xd   :  { %p60_p7 = pnand %p59_p6, %p53_p3 }
   0xf   :  { %63 = shalt.err (!%p60_p7)
}
  0x10   :  { %17 = dma.hbm_to_vmem [thread:$0]  %s126_s0, 256, %s15_s7, [#allocation3]  }
  0x11   :  { %86 = dma.done.wait [#allocation3], 256  }
  0x12   :  { %87 = vsyncadd [#allocation3], 4294967040  ;;  %s91_s18 = smov [#allocation5]   ;;  %v21_v0 = vld [vmem:[#allocation2] sm:$0xff]  ;;  %v22_v1 = vld [vmem:[#allocation2 + $0x8] sm:$0xff] }
  0x13   :  { %s31_s19 = sshll.u32 %s91_s18, 4  ;;  %23 = vst [vmem:[#allocation5] sm:$0xff] %v21_v0  ;;  %24 = vst [vmem:[#allocation5 + $0x8] sm:$0xff] %v22_v1  ;;  %s32_s19 = int_to_ptr.vmem [resolvable:$true] %s31_s19 }
  0x14   :  { %s64_s20 = scalar_lea.vmem %s32_s19, 256  ;;  %p69_p9 = scmp.lt.s32.totalorder %s32_s19, %s32_s19 }
  0x15   :  { %p65_p8 = scmp.ne.s32.totalorder %s32_s19, %s64_s20  ;;  %p70_p10 = scmp.lt.s32.totalorder %s64_s20, %s64_s20 }
  0x17   :  { %p71_p11 = por %p70_p10, %p69_p9 }
  0x19   :  { %p72_p12 = pnand %p71_p11, %p65_p8 }
  0x1b   :  { %75 = shalt.err (!%p72_p12)
}
  0x1c   :  { %s76_s0 = scalar_lea.hbm %s127_s1, 256 }
  0x1d   :  { %p77_p13 = scmp.ne.s32.totalorder %s127_s1, %s76_s0  ;;  %p80_p0 = scmp.lt.u32.totalorder %s76_s0, %s127_s1 }
  0x1f   :  { %p82_p1 = pnand %p80_p0, %p77_p13 }
  0x21   :  { %85 = shalt.err (!%p82_p1)
}
  0x22   :  { %34 = dma.vmem_to_hbm [thread:$0]  %s32_s19, 256, %s127_s1, [#allocation4]  }
  0x23   :  { %88 = dma.done.wait [#allocation4], 256  }
  0x24   :  { %89 = vsyncadd [#allocation4], 4294967040 }
  0x25   :  { %38 = vsyncpa [#allocation3], 1 }
  0x26   :  { %39 = vsyncpa [#allocation4], 1 }

</bundles_post_ra>
